<compile_context>
chip_gen: v5e
topology: v5e:2x2
jax: 0.10.0
libtpu: 0.0.40
codegen_flags: <defaults>
</compile_context>

<pallas_src>
import jax
import jax.numpy as jnp
from jax.experimental import pallas as pl
from jax.experimental.pallas import tpu as pltpu

_LANE = 128
_TARGET_BLOCK_BYTES = 4 * 1024 * 1024   # ~4 MiB x block
_MAX_BLOCK_ROWS = 1024                  # caps the lane-padded (br, 128) param block
_MIN_GRID_STEPS = 8                     # keep both v7x cores busy / pipeline deep


def _normalize_kernel(param_ref, x_ref, o_ref):
    # param_ref: (br, 2) f32 -- col 0 = 1/std, col 1 = -mean/std (per N*C row)
    # x_ref/o_ref: (br, bc) tile of the flattened (N*C, H*W) slab
    p = param_ref[...]
    scale = p[:, 0:1]
    bias = p[:, 1:2]
    x = x_ref[...].astype(jnp.float32)   # affine in f32; VPU slack makes this free
    o_ref[...] = (x * scale + bias).astype(o_ref.dtype)


def _sublane_multiple(itemsize):
    # Native packing: (8,128) f32, (16,128) bf16, (32,128) int8/fp8.
    return max(8, 32 // max(1, itemsize))


def _block_sizes(rows, cols, itemsize):
    sublane = _sublane_multiple(itemsize)

    # Lane (last) dim: always a multiple of 128; ragged tail handled by cdiv grid.
    if cols <= _LANE:
        bc = cols
    else:
        max_bc = max(_LANE,
                     (_TARGET_BLOCK_BYTES // (sublane * itemsize)) // _LANE * _LANE)
        bc = min((cols // _LANE) * _LANE, max_bc)

    # Sublane dim: multiple of the dtype's native packing (or the full extent),
    # capped so the lane-padded (br, 128) f32 param block stays small.
    if rows <= sublane:
        br = rows
    else:
        budget_rows = max(
            sublane,
            (_TARGET_BLOCK_BYTES // max(1, bc * itemsize)) // sublane * sublane)
        budget_rows = min(budget_rows, _MAX_BLOCK_ROWS)
        br = rows if rows <= budget_rows else budget_rows

    # Ensure a reasonably deep, balanced grid for megacore / pipelining on big
    # inputs, but never shrink already-tiny blocks.
    for _ in range(8):
        steps = pl.cdiv(rows, br) * pl.cdiv(cols, bc)
        if steps >= _MIN_GRID_STEPS:
            break
        if bc >= 8 * _LANE:                       # split wide lane blocks first
            bc = max(_LANE, (bc // 2) // _LANE * _LANE)
        elif br >= 2 * sublane:
            br = max(sublane, (br // 2) // sublane * sublane)
        else:
            break
    return br, bc


def inference_data_augmentation(x, mean, std):
    """Pallas TPU implementation of K.augmentation.Normalize(mean, std).

    x:    (N, C, H, W) floating-point array (NCHW, matching PyTorch)
    mean: (C,) per-channel mean
    std:  (C,) per-channel std
    """
    N, C, H, W = x.shape
    rows, cols = N * C, H * W
    x2d = x.reshape(rows, cols)

    # Exact f32 precompute; kernel computes x * scale + bias (no per-element divide).
    inv_std = 1.0 / std.astype(jnp.float32)
    scale_rows = jnp.tile(inv_std, (N,))                             # (rows,)
    bias_rows = jnp.tile(-mean.astype(jnp.float32) * inv_std, (N,))  # (rows,)
    params = jnp.stack([scale_rows, bias_rows], axis=-1).astype(jnp.float32)  # (rows, 2)

    itemsize = jnp.dtype(x.dtype).itemsize
    br, bc = _block_sizes(rows, cols, itemsize)
    grid = (pl.cdiv(rows, br), pl.cdiv(cols, bc))

    # Explicit VMEM budget: double-buffered x + out blocks plus the lane-padded
    # (br, 128) f32 param block, with headroom.  Safe on every generation
    # (<= v7x's 64 MiB physical; well under v5e/v6e's 128 MiB).
    pad_rows = ((min(br, rows) + 7) // 8) * 8
    vmem_needed = (2 * 2 * br * bc * itemsize) + (2 * pad_rows * 128 * 4)
    vmem_limit = int(min(48 * 2**20, max(32 * 2**20, 2 * vmem_needed)))

    out2d = pl.pallas_call(
        _normalize_kernel,
        out_shape=jax.ShapeDtypeStruct((rows, cols), x.dtype),
        grid_spec=pltpu.PrefetchScalarGridSpec(
            num_scalar_prefetch=0,
            grid=grid,
            in_specs=[
                pl.BlockSpec((br, 2), lambda i, j: (i, 0)),    # merged scale/bias (f32)
                pl.BlockSpec((br, bc), lambda i, j: (i, j)),   # x tile
            ],
            out_specs=pl.BlockSpec((br, bc), lambda i, j: (i, j)),
        ),
        compiler_params=pltpu.CompilerParams(
            dimension_semantics=("parallel", "parallel"),
            vmem_limit_bytes=vmem_limit,
        ),
        cost_estimate=pl.CostEstimate(
            flops=2 * rows * cols,
            transcendentals=0,
            bytes_accessed=2 * rows * cols * itemsize + rows * 2 * 4,
        ),
    )(params, x2d)

    return out2d.reshape(N, C, H, W)


if __name__ == "__main__":
    key = jax.random.PRNGKey(0)
    N, C, H, W = 2, 4, 16, 16
    x = jax.random.uniform(key, (N, C, H, W), dtype=jnp.float32)

    # Deterministic per-channel normalization parameters (ImageNet-like).
    mean = jnp.array([0.485, 0.456, 0.406, 0.5], dtype=jnp.float32)
    std = jnp.array([0.229, 0.224, 0.225, 0.25], dtype=jnp.float32)

    # f32 path: exact match against (x - mean) / std.
    out = inference_data_augmentation(x, mean, std)
    out = jax.block_until_ready(out)
    ref = (x - mean[None, :, None, None]) / std[None, :, None, None]
    assert out.shape == (N, C, H, W)
    assert jnp.allclose(out, ref, atol=1e-5, rtol=1e-5)

    # bf16 path: affine done in f32 inside the kernel, only the store is bf16.
    x_bf16 = x.astype(jnp.bfloat16)
    out_bf16 = jax.block_until_ready(inference_data_augmentation(x_bf16, mean, std))
    ref_bf16 = (x_bf16.astype(jnp.float32) - mean[None, :, None, None]) / std[None, :, None, None]
    assert out_bf16.dtype == jnp.bfloat16
    assert jnp.allclose(out_bf16.astype(jnp.float32), ref_bf16, atol=3e-2, rtol=3e-2)

    print("KERNEL_OK")
</pallas_src>

<mosaic_0001>
module attributes {stable_mosaic.version = 11 : i64} {
  func.func @_normalize_kernel(%arg0: i32, %arg1: i32, %arg2: memref<8x2xf32, #tpu.memory_space<vmem>>, %arg3: memref<8x256xf32, #tpu.memory_space<vmem>>, %arg4: memref<8x256xf32, #tpu.memory_space<vmem>>) attributes {dimension_semantics = [#tpu.dimension_semantics<parallel>, #tpu.dimension_semantics<parallel>], iteration_bounds = array<i64: 1, 1>, scalar_prefetch = 0 : i64, scratch_operands = 0 : i64, tpu.core_type = #tpu.core_type<tc>, window_params = [{transform_indices = @transform_0, window_bounds = array<i64: 8, 2>}, {transform_indices = @transform_1, window_bounds = array<i64: 8, 256>}, {transform_indices = @transform_2, window_bounds = array<i64: 8, 256>}]} {
    %c0 = arith.constant 0 : index
    %c0_0 = arith.constant 0 : index
    %0 = vector.load %arg2[%c0, %c0_0] : memref<8x2xf32, #tpu.memory_space<vmem>>, vector<8x2xf32>
    %1 = vector.extract_strided_slice %0 {offsets = [0, 0], sizes = [8, 1], strides = [1, 1]} : vector<8x2xf32> to vector<8x1xf32>
    %2 = vector.extract_strided_slice %0 {offsets = [0, 1], sizes = [8, 1], strides = [1, 1]} : vector<8x2xf32> to vector<8x1xf32>
    %c0_1 = arith.constant 0 : index
    %c0_2 = arith.constant 0 : index
    %3 = vector.load %arg3[%c0_1, %c0_2] : memref<8x256xf32, #tpu.memory_space<vmem>>, vector<8x256xf32>
    %4 = vector.broadcast %1 : vector<8x1xf32> to vector<8x256xf32>
    %5 = arith.mulf %3, %4 : vector<8x256xf32>
    %6 = vector.broadcast %2 : vector<8x1xf32> to vector<8x256xf32>
    %7 = arith.addf %5, %6 : vector<8x256xf32>
    %c0_3 = arith.constant 0 : index
    %c0_4 = arith.constant 0 : index
    %8 = vector.load %arg4[%c0_3, %c0_4] : memref<8x256xf32, #tpu.memory_space<vmem>>, vector<8x256xf32>
    tpu.vector_store %arg4[%c0_3, %c0_4], %7 {strides = array<i32>} : memref<8x256xf32, #tpu.memory_space<vmem>>, vector<8x256xf32>,
    return
  }
  func.func @transform_0(%arg0: i32, %arg1: i32) -> (i32, i32) {
    %c0_i32 = arith.constant 0 : i32
    %c0_i32_0 = arith.constant 0 : i32
    return %arg0, %c0_i32 : i32, i32
  }
  func.func @transform_1(%arg0: i32, %arg1: i32) -> (i32, i32) {
    %c0_i32 = arith.constant 0 : i32
    return %arg0, %arg1 : i32, i32
  }
  func.func @transform_2(%arg0: i32, %arg1: i32) -> (i32, i32) {
    %c0_i32 = arith.constant 0 : i32
    return %arg0, %arg1 : i32, i32
  }
}

</mosaic_0001>

<bundles_post_ra>
// kernel: tpu_custom_call.1
= control target key start
LH: loop header
LB: loop body
LE: loop exit
PB: predicated region body
PF: predicated region fallthrough
CT: control target
= control target key end

     0   :  { %7 = vsyncpa [#allocation3], 0  ;;  %s147_s0 = inlined_call_operand.vmem [shape: f32[8,2], index: 0, kind: input, shape index: {}]   ;;  %s148_s1 = inlined_call_operand.hbm [shape: f32[8,256], index: 1, kind: input, shape index: {}]   ;;  %s149_s2 = inlined_call_operand.hbm [shape: f32[8,256], index: 2, kind: output, shape index: {}]  }
   0x1   :  { %8 = vsyncpa [#allocation4], 0  ;;  %s16_s11 = sshll.u32 %s148_s1, 4  ;;  %s119_s12 = smov [#allocation2]   ;;  %s17_s11 = int_to_ptr.hbm [resolvable:$true] %s16_s11 }
   0x2   :  { %s18_s13 = sshll.u32 %s119_s12, 4  ;;  %s19_s13 = int_to_ptr.vmem [resolvable:$true] %s18_s13 }
   0x3   :  { %21 = dma.hbm_to_vmem [thread:$0]  %s17_s11, 256, %s19_s13, [#allocation3]  }
   0x4   :  { %115 = dma.done.wait [#allocation3], 256  }
   0x5   :  { %116 = vsyncadd [#allocation3], 4294967040  ;;  %v120_v0 = vmov 0   ;;  %v26_v1 = vld [vmem:[%s147_s0] sm:$0xff]  ;;  %v121_v2 = vmov 1   ;;  %v28_v5 = vld [vmem:[#allocation2 + $0x8] sm:$0xff] }
   0x6   :  { %65 = vset.pattern.permute.xlu0 %v120_v0  ;;  %v27_v4 = vld [vmem:[#allocation2] sm:$0xff]  ;;  %s122_s1 = smov [#allocation5]   ;;  %s51_s19 = sshll.u32 %s149_s2, 4  ;;  %s52_s19 = int_to_ptr.hbm [resolvable:$true] %s51_s19 }
   0x7   :  { %31 = vperm.xlu0 %65, %v26_v1   ;;  %s49_s16 = sshll.u32 %s122_s1, 4  ;;  %s50_s16 = int_to_ptr.vmem [resolvable:$true] %s49_s16 }
   0xf   :  { %66 = vset.pattern.permute.xlu0 %v121_v2 }
  0x10   :  { %37 = vperm.xlu0 %66, %v26_v1  }
  0x79   :  { %v32_v3 = vpop.permute.xlu0 %31 }
  0x7a   :  { %v34_v6 = vmul.f32 %v32_v3, %v27_v4  ;;  %v35_v7 = vmul.f32 %v32_v3, %v28_v5 }
  0x82   :  { %v38_v8 = vpop.permute.xlu0 %37 }
  0x83   :  { %v40_v9 = vadd.f32 %v38_v8, %v34_v6  ;;  %v41_v10 = vadd.f32 %v38_v8, %v35_v7 }
  0x85   :  { %42 = vst [vmem:[#allocation5] sm:$0xff] %v40_v9 }
  0x86   :  { %43 = vst [vmem:[#allocation5 + $0x8] sm:$0xff] %v41_v10 }
  0x87   :  { %54 = dma.vmem_to_hbm [thread:$0]  %s50_s16, 256, %s52_s19, [#allocation4]  }
  0x88   :  { %117 = dma.done.wait [#allocation4], 256  }
  0x89   :  { %118 = vsyncadd [#allocation4], 4294967040 }
  0x8a   :  { %59 = vsyncpa [#allocation3], 1 }
  0x8b   :  { %60 = vsyncpa [#allocation4], 1 }

</bundles_post_ra>
